<compile_context>
chip_gen: v7x
topology: tpu7x:2x2x1
jax: 0.10.0
libtpu: 0.0.40
codegen_flags: <defaults>
</compile_context>

<pallas_src>
from functools import partial

import jax
import jax.numpy as jnp
from jax.experimental import pallas as pl
from jax.experimental.pallas import tpu as pltpu


def _linear_attention_kernel(x_ref, fi_ref, w_ref, b_ref, o_ref, *,
                             m_real, compute_dtype):
    # x_ref : (bt, tn, Dp)   fi_ref : (bt, Mp, Dp)
    # w_ref : (Dp, Dp) [out, in]   b_ref : (1, Dp)   o_ref : (bt, tn, Dp)
    bt, tn, dp = x_ref.shape
    mp = fi_ref.shape[1]

    x = x_ref[...].astype(compute_dtype)
    fi = fi_ref[...].astype(compute_dtype)
    w = w_ref[...].astype(compute_dtype)

    # y = x @ W^T + b  -- fold (bt, tn) rows into one lane-dense MXU LHS.
    # NT contraction (contract both lane dims) is MXU-native; no transpose.
    x2 = x.reshape(bt * tn, dp)
    y2 = jax.lax.dot_general(
        x2, w, (((1,), (1,)), ((), ())),
        preferred_element_type=jnp.float32,
    )
    y = y2.reshape(bt, tn, dp) + b_ref[...].astype(jnp.float32)

    # s = y @ Fi^T : (bt, tn, Mp)   (batched NT contraction, f32 accumulation)
    s = jnp.einsum(
        "bnd,bmd->bnm", y.astype(compute_dtype), fi,
        preferred_element_type=jnp.float32,
    )

    # Mask padded M columns out of the softmax (padded Fi rows are zeros;
    # without the mask their exp(0 - max) terms corrupt the denominator).
    if mp != m_real:
        col = jax.lax.broadcasted_iota(jnp.int32, (1, 1, mp), 2)
        s = jnp.where(col < m_real, s, jnp.float32(-1e30))

    # Numerically-stable softmax over M; exact f32 normalization.
    s = s - jnp.max(s, axis=-1, keepdims=True)
    p = jnp.exp(s)
    p = p * (1.0 / jnp.sum(p, axis=-1, keepdims=True))

    # out = att @ Fi : (bt, tn, Dp)
    out = jnp.einsum(
        "bnm,bmd->bnd", p.astype(compute_dtype), fi,
        preferred_element_type=jnp.float32,
    )
    o_ref[...] = out.astype(o_ref.dtype)


def linear_attention(x, fi, w, b, *, tn=None, bt=None, use_bf16_matmul=False):
    """x: (B, N, D), fi: (B, M, D), w: (D, D) [out,in], b: (D,) -> (B, N, D)."""
    B, N, D = x.shape
    _, M, _ = fi.shape
    out_dtype = x.dtype

    if x.dtype == jnp.bfloat16 or use_bf16_matmul:
        compute_dtype = jnp.bfloat16
    else:
        compute_dtype = jnp.float32

    # Lane-dense feature and score dims (multiples of 128); zero padding is
    # semantically inert here (padded D columns) or masked (padded M rows).
    Dp = pl.cdiv(D, 128) * 128
    Mp = pl.cdiv(M, 128) * 128

    # Query tile: multiple of 8 sublanes, capped at 256 rows per step.
    if tn is None:
        tn = min(256, pl.cdiv(N, 8) * 8)
    Np = pl.cdiv(N, tn) * tn

    # Fold batch elements per grid step when N is small so the linear matmul
    # presents ~256 rows to the MXU (largest divisor of B up to 256//tn).
    if bt is None:
        target = max(1, 256 // tn)
        bt = 1
        for cand in range(min(B, target), 0, -1):
            if B % cand == 0:
                bt = cand
                break

    if Dp != D:
        x = jnp.pad(x, ((0, 0), (0, 0), (0, Dp - D)))
        fi = jnp.pad(fi, ((0, 0), (0, 0), (0, Dp - D)))
        w = jnp.pad(w, ((0, Dp - D), (0, Dp - D)))
        b = jnp.pad(b, ((0, Dp - D),))
    if Mp != M:
        fi = jnp.pad(fi, ((0, 0), (0, Mp - M), (0, 0)))
    if Np != N:
        x = jnp.pad(x, ((0, 0), (0, Np - N), (0, 0)))
    b2 = b.reshape(1, Dp)

    # VMEM budget: double-buffered x/out/Fi tiles, single-buffered W/b,
    # f32 intermediates (y, s/p, output accumulator).
    isz = jnp.dtype(x.dtype).itemsize
    fsz = jnp.dtype(fi.dtype).itemsize
    wsz = jnp.dtype(w.dtype).itemsize
    vmem_bytes = (
        2 * bt * tn * Dp * isz          # x double buffer
        + 2 * bt * tn * Dp * isz        # out double buffer
        + 2 * bt * Mp * Dp * fsz        # Fi double buffer
        + Dp * Dp * wsz + Dp * 4        # W, bias (single-buffered)
        + 4 * bt * tn * (Mp + 2 * Dp) * 4  # f32 intermediates
    )
    try:
        vmem_cap = pltpu.get_tpu_info().vmem_capacity_bytes
    except Exception:
        vmem_cap = 64 << 20
    vmem_ceiling = max(16 << 20, int(vmem_cap * 0.85))
    vmem_limit = int(min(max(2 * vmem_bytes, 16 << 20), vmem_ceiling))

    kernel = partial(_linear_attention_kernel, m_real=M,
                     compute_dtype=compute_dtype)

    out = pl.pallas_call(
        kernel,
        out_shape=jax.ShapeDtypeStruct((B, Np, Dp), out_dtype),
        grid_spec=pltpu.PrefetchScalarGridSpec(
            num_scalar_prefetch=0,
            grid=(B // bt, Np // tn),
            in_specs=[
                # x query tile (per batch-tile, per N-tile)
                pl.BlockSpec((bt, tn, Dp), lambda bi, ni: (bi, ni, 0)),
                # Fi: full (Mp, Dp) per batch-tile, constant in ni -> resident
                pl.BlockSpec((bt, Mp, Dp), lambda bi, ni: (bi, 0, 0)),
                # W, b: grid-invariant -> single-buffered
                pl.BlockSpec((Dp, Dp), lambda bi, ni: (0, 0),
                             pipeline_mode=pl.Buffered(1)),
                pl.BlockSpec((1, Dp), lambda bi, ni: (0, 0),
                             pipeline_mode=pl.Buffered(1)),
            ],
            out_specs=pl.BlockSpec((bt, tn, Dp), lambda bi, ni: (bi, ni, 0)),
        ),
        compiler_params=pltpu.CompilerParams(
            dimension_semantics=("parallel", "parallel"),
            vmem_limit_bytes=vmem_limit,
        ),
    )(x, fi, w, b2)

    return out[:, :N, :D]


def linear_attention_ref(x, fi, w, b):
    y = jnp.einsum("bnd,kd->bnk", x, w) + b
    s = jnp.einsum("bnk,bmk->bnm", y, fi)
    p = jax.nn.softmax(s, axis=-1)
    return jnp.einsum("bnm,bmd->bnd", p, fi)


if __name__ == "__main__":
    B, N, M, D = 2, 8, 8, 32

    key = jax.random.PRNGKey(0)
    kx, kf, kw, kb = jax.random.split(key, 4)

    x = jax.random.normal(kx, (B, N, D), dtype=jnp.float32)
    fi = jax.random.normal(kf, (B, M, D), dtype=jnp.float32)
    # PyTorch-style Linear(dim, dim) init bounds
    bound = 1.0 / (D ** 0.5)
    w = jax.random.uniform(kw, (D, D), minval=-bound, maxval=bound,
                           dtype=jnp.float32)
    b = jax.random.uniform(kb, (D,), minval=-bound, maxval=bound,
                           dtype=jnp.float32)

    out = jax.block_until_ready(linear_attention(x, fi, w, b))
    ref = linear_attention_ref(x, fi, w, b)

    assert out.shape == (B, N, D)
    err = float(jnp.max(jnp.abs(out - ref)))
    assert jnp.allclose(out, ref, atol=1e-4, rtol=1e-4), err

    print("KERNEL_OK")
</pallas_src>

<mosaic_0001>
module attributes {stable_mosaic.version = 11 : i64} {
  func.func @_linear_attention_kernel(%arg0: i32, %arg1: i32, %arg2: memref<2x8x128xf32, #tpu.memory_space<vmem>>, %arg3: memref<2x128x128xf32, #tpu.memory_space<vmem>>, %arg4: memref<128x128xf32, #tpu.memory_space<vmem>>, %arg5: memref<1x128xf32, #tpu.memory_space<vmem>>, %arg6: memref<2x8x128xf32, #tpu.memory_space<vmem>>) attributes {dimension_semantics = [#tpu.dimension_semantics<parallel>, #tpu.dimension_semantics<parallel>], iteration_bounds = array<i64: 1, 1>, scalar_prefetch = 0 : i64, scratch_operands = 0 : i64, tpu.core_type = #tpu.core_type<tc>, window_params = [{transform_indices = @transform_0, window_bounds = array<i64: 2, 8, 128>}, {transform_indices = @transform_1, window_bounds = array<i64: 2, 128, 128>}, {pipeline_mode = #tpu.pipeline_mode<synchronous>, transform_indices = @transform_2, window_bounds = array<i64: 128, 128>}, {pipeline_mode = #tpu.pipeline_mode<synchronous>, transform_indices = @transform_3, window_bounds = array<i64: 1, 128>}, {transform_indices = @transform_4, window_bounds = array<i64: 2, 8, 128>}]} {
    %c0 = arith.constant 0 : index
    %c0_0 = arith.constant 0 : index
    %c0_1 = arith.constant 0 : index
    %0 = vector.load %arg2[%c0, %c0_0, %c0_1] : memref<2x8x128xf32, #tpu.memory_space<vmem>>, vector<2x8x128xf32>
    %c0_2 = arith.constant 0 : index
    %c0_3 = arith.constant 0 : index
    %c0_4 = arith.constant 0 : index
    %1 = vector.load %arg3[%c0_2, %c0_3, %c0_4] : memref<2x128x128xf32, #tpu.memory_space<vmem>>, vector<2x128x128xf32>
    %c0_5 = arith.constant 0 : index
    %c0_6 = arith.constant 0 : index
    %2 = vector.load %arg4[%c0_5, %c0_6] : memref<128x128xf32, #tpu.memory_space<vmem>>, vector<128x128xf32>
    %3 = vector.shape_cast %0 : vector<2x8x128xf32> to vector<16x128xf32>
    %cst = arith.constant dense<0.000000e+00> : vector<16x128xf32>
    %4 = tpu.matmul %3, %2, %cst {dimension_numbers = #tpu.dot_dimension_numbers<[1], [1], [0], [0], [0, 0, 1, 0], [], []>} : vector<16x128xf32>, vector<128x128xf32>, vector<16x128xf32> -> vector<16x128xf32>
    %5 = vector.shape_cast %4 : vector<16x128xf32> to vector<2x8x128xf32>
    %c0_7 = arith.constant 0 : index
    %c0_8 = arith.constant 0 : index
    %6 = vector.load %arg5[%c0_7, %c0_8] : memref<1x128xf32, #tpu.memory_space<vmem>>, vector<1x128xf32>
    %7 = vector.shape_cast %6 : vector<1x128xf32> to vector<1x1x128xf32>
    %8 = vector.broadcast %7 : vector<1x1x128xf32> to vector<2x8x128xf32>
    %9 = arith.addf %5, %8 : vector<2x8x128xf32>
    "tpu.trace_start"() <{level = 10 : i32, message = "bnd,bmd->bnm"}> : () -> ()
    %cst_9 = arith.constant dense<0.000000e+00> : vector<2x8x128xf32>
    %10 = tpu.matmul %9, %1, %cst_9 {dimension_numbers = #tpu.dot_dimension_numbers<[2], [2], [1], [1], [0, 0, 0, 1, 1, 1], [0], [0]>} : vector<2x8x128xf32>, vector<2x128x128xf32>, vector<2x8x128xf32> -> vector<2x8x128xf32>
    "tpu.trace_stop"() : () -> ()
    %11 = tpu.iota {dimensions = array<i32: 2>} : vector<1x1x128xi32>
    %c8_i32 = arith.constant 8 : i32
    %12 = vector.broadcast %c8_i32 : i32 to vector<1x1x128xi32>
    %13 = arith.cmpi slt, %11, %12 : vector<1x1x128xi32>
    %cst_10 = arith.constant -1.000000e+30 : f32
    %14 = vector.shape_cast %13 : vector<1x1x128xi1> to vector<1x1x128xi1>
    %15 = vector.broadcast %14 : vector<1x1x128xi1> to vector<2x8x128xi1>
    %16 = vector.broadcast %cst_10 : f32 to vector<2x8x128xf32>
    %17 = arith.select %15, %10, %16 : vector<2x8x128xi1>, vector<2x8x128xf32>
    %cst_11 = arith.constant dense<0xFF800000> : vector<2x8xf32>
    %18 = vector.multi_reduction <maximumf>, %17, %cst_11 [2] : vector<2x8x128xf32> to vector<2x8xf32>
    %19 = vector.shape_cast %18 : vector<2x8xf32> to vector<2x8x1xf32>
    %20 = vector.broadcast %19 : vector<2x8x1xf32> to vector<2x8x128xf32>
    %21 = arith.subf %17, %20 : vector<2x8x128xf32>
    %22 = math.exp %21 : vector<2x8x128xf32>
    %cst_12 = arith.constant dense<0.000000e+00> : vector<2x8xf32>
    %23 = vector.multi_reduction <add>, %22, %cst_12 [2] : vector<2x8x128xf32> to vector<2x8xf32>
    %24 = vector.shape_cast %23 : vector<2x8xf32> to vector<2x8x1xf32>
    %cst_13 = arith.constant 1.000000e+00 : f32
    %25 = vector.broadcast %cst_13 : f32 to vector<2x8x1xf32>
    %26 = arith.divf %25, %24 : vector<2x8x1xf32>
    %27 = vector.broadcast %26 : vector<2x8x1xf32> to vector<2x8x128xf32>
    %28 = arith.mulf %22, %27 : vector<2x8x128xf32>
    "tpu.trace_start"() <{level = 10 : i32, message = "bnm,bmd->bnd"}> : () -> ()
    %cst_14 = arith.constant dense<0.000000e+00> : vector<2x8x128xf32>
    %29 = tpu.matmul %28, %1, %cst_14 {dimension_numbers = #tpu.dot_dimension_numbers<[2], [1], [1], [2], [0, 0, 0, 1, 1, 2], [0], [0]>} : vector<2x8x128xf32>, vector<2x128x128xf32>, vector<2x8x128xf32> -> vector<2x8x128xf32>
    "tpu.trace_stop"() : () -> ()
    %c0_15 = arith.constant 0 : index
    %c0_16 = arith.constant 0 : index
    %c0_17 = arith.constant 0 : index
    %30 = vector.load %arg6[%c0_15, %c0_16, %c0_17] : memref<2x8x128xf32, #tpu.memory_space<vmem>>, vector<2x8x128xf32>
    tpu.vector_store %arg6[%c0_15, %c0_16, %c0_17], %29 {strides = array<i32>} : memref<2x8x128xf32, #tpu.memory_space<vmem>>, vector<2x8x128xf32>,
    return
  }
  func.func @transform_0(%arg0: i32, %arg1: i32) -> (i32, i32, i32) {
    %c0_i32 = arith.constant 0 : i32
    %c0_i32_0 = arith.constant 0 : i32
    return %arg0, %arg1, %c0_i32 : i32, i32, i32
  }
  func.func @transform_1(%arg0: i32, %arg1: i32) -> (i32, i32, i32) {
    %c0_i32 = arith.constant 0 : i32
    %c0_i32_0 = arith.constant 0 : i32
    %c0_i32_1 = arith.constant 0 : i32
    return %arg0, %c0_i32, %c0_i32_0 : i32, i32, i32
  }
  func.func @transform_2(%arg0: i32, %arg1: i32) -> (i32, i32) {
    %c0_i32 = arith.constant 0 : i32
    %c0_i32_0 = arith.constant 0 : i32
    %c0_i32_1 = arith.constant 0 : i32
    return %c0_i32, %c0_i32_0 : i32, i32
  }
  func.func @transform_3(%arg0: i32, %arg1: i32) -> (i32, i32) {
    %c0_i32 = arith.constant 0 : i32
    %c0_i32_0 = arith.constant 0 : i32
    %c0_i32_1 = arith.constant 0 : i32
    return %c0_i32, %c0_i32_0 : i32, i32
  }
  func.func @transform_4(%arg0: i32, %arg1: i32) -> (i32, i32, i32) {
    %c0_i32 = arith.constant 0 : i32
    %c0_i32_0 = arith.constant 0 : i32
    return %arg0, %arg1, %c0_i32 : i32, i32, i32
  }
}

</mosaic_0001>

<bundles_post_ra>
// kernel: tpu_custom_call.1
= control target key start
LH: loop header
LB: loop body
LE: loop exit
PB: predicated region body
PF: predicated region fallthrough
CT: control target
= control target key end

     0   :  { %9 = vsyncpa [#allocation3], 0  ;;  %s1225_s0 = inlined_call_operand.hbm [shape: f32[2,8,128], index: 0, kind: input, shape index: {}]   ;;  %s1226_s1 = inlined_call_operand.hbm [shape: f32[2,128,128], index: 1, kind: input, shape index: {}]   ;;  %s1227_s2 = inlined_call_operand.hbm [shape: f32[128,128], index: 2, kind: input, shape index: {}]   ;;  %s1228_s3 = inlined_call_operand.vmem [shape: f32[1,128], index: 3, kind: input, shape index: {}]   ;;  %s1229_s4 = inlined_call_operand.hbm [shape: f32[2,8,128], index: 4, kind: output, shape index: {}]  }
   0x1   :  { %10 = vsyncpa [#allocation6], 0 }
   0x2   :  { %11 = vsyncpa [#allocation4], 0  ;;  %s1021_s15 = smov [#allocation5]   ;;  %s1022_s17 = smov [#allocation2]  }
   0x3   :  { %s29_s16 = sshll.u32 %s1021_s15, 4  ;;  %s17_s18 = sshll.u32 %s1022_s17, 4  ;;  %s30_s16 = int_to_ptr.vmem [resolvable:$true] %s29_s16  ;;  %s1055_s18 = int_to_ptr.vmem [resolvable:$true] %s17_s18 }
   0x4   :  { %s927_s21 = scalar_lea.hbm %s1226_s1, 4096 }
   0x5   :  { %p928_p0 = scmp.ne.s32.totalorder %s1226_s1, %s927_s21  ;;  %p931_p1 = scmp.lt.u32.totalorder %s927_s21, %s1226_s1 }
   0x7   :  { %p933_p2 = pnand %p931_p1, %p928_p0 }
   0x9   :  { %936 = shalt.err (!%p933_p2)
}
   0xa   :  { %s937_s26 = scalar_lea.vmem %s30_s16, 4096  ;;  %p942_p4 = scmp.lt.s32.totalorder %s30_s16, %s30_s16 }
   0xb   :  { %p938_p3 = scmp.ne.s32.totalorder %s30_s16, %s937_s26  ;;  %p943_p5 = scmp.lt.s32.totalorder %s937_s26, %s937_s26 }
   0xd   :  { %p944_p6 = por %p943_p5, %p942_p4 }
   0xf   :  { %p945_p7 = pnand %p944_p6, %p938_p3 }
  0x11   :  { %948 = shalt.err (!%p945_p7)
}
  0x12   :  { %s1023_s27 = smov 128   ;;  %s1024_s28 = smov 8  }
  0x13   :  { %35 = dma.hbm_to_vmem [thread:$0]  %s1226_s1, 4096, %s30_s16, [#allocation6], %s1023_s27, %s1023_s27, %s1024_s28  }
  0x14   :  { %s949_s7 = scalar_lea.hbm %s1225_s0, 256 }
  0x15   :  { %p950_p8 = scmp.ne.s32.totalorder %s1225_s0, %s949_s7  ;;  %p953_p9 = scmp.lt.u32.totalorder %s949_s7, %s1225_s0 }
  0x17   :  { %p955_p10 = pnand %p953_p9, %p950_p8 }
  0x19   :  { %958 = shalt.err (!%p955_p10)
}
  0x1a   :  { %s959_s12 = scalar_lea.vmem %s1055_s18, 256  ;;  %p964_p12 = scmp.lt.s32.totalorder %s1055_s18, %s1055_s18 }
  0x1b   :  { %p960_p11 = scmp.ne.s32.totalorder %s1055_s18, %s959_s12  ;;  %p965_p13 = scmp.lt.s32.totalorder %s959_s12, %s959_s12 }
  0x1d   :  { %p966_p0 = por %p965_p13, %p964_p12 }
  0x1f   :  { %p967_p1 = pnand %p966_p0, %p960_p11 }
  0x21   :  { %970 = shalt.err (!%p967_p1)
}
  0x22   :  { %23 = dma.hbm_to_vmem [thread:$0]  %s1225_s0, 256, %s1055_s18, [#allocation3], %s1023_s27, %s1023_s27, %s1024_s28  }
  0x23   :  { %s1025_s14 = smov [#allocation7]   ;;  %s971_s19 = scalar_lea.hbm %s1227_s2, 2048 }
  0x24   :  { %s41_s15 = sshll.u32 %s1025_s14, 4  ;;  %p972_p2 = scmp.ne.s32.totalorder %s1227_s2, %s971_s19  ;;  %s42_s15 = int_to_ptr.vmem [resolvable:$true] %s41_s15 }
  0x25   :  { %p975_p3 = scmp.lt.u32.totalorder %s971_s19, %s1227_s2 }
  0x27   :  { %p977_p4 = pnand %p975_p3, %p972_p2 }
  0x29   :  { %980 = shalt.err (!%p977_p4)
}
  0x2a   :  { %s981_s24 = scalar_lea.vmem %s42_s15, 2048  ;;  %p986_p6 = scmp.lt.s32.totalorder %s42_s15, %s42_s15 }
  0x2b   :  { %p982_p5 = scmp.ne.s32.totalorder %s42_s15, %s981_s24  ;;  %p987_p7 = scmp.lt.s32.totalorder %s981_s24, %s981_s24 }
  0x2d   :  { %p988_p8 = por %p987_p7, %p986_p6 }
  0x2f   :  { %p989_p9 = pnand %p988_p8, %p982_p5 }
  0x31   :  { %992 = shalt.err (!%p989_p9)
}
  0x32   :  { %47 = dma.hbm_to_vmem [thread:$0]  %s1227_s2, 2048, %s42_s15, [#allocation6], %s1023_s27, %s1023_s27, %s1024_s28  }
  0x33   :  { %1015 = dma.done.wait [#allocation3], 256  }
  0x34   :  { %1016 = vsyncadd [#allocation3], 4294967040 }
  0x35   :  { %1017 = dma.done.wait [#allocation6], 6144  }
  0x36   :  { %1018 = vsyncadd [#allocation6], 4294961152  ;;  %v1026_v0 = vmov 0.0|0.0   ;;  %v93_v1 = vld [vmem:[#allocation7] sm:$0xff]  ;;  %v94_v2 = vld [vmem:[#allocation7 + $0x8] sm:$0xff]  ;;  %vm1027_vm0 = vmmov 0  }
  0x37   :  { %814 = vmatprep.subr.bf16.mxu1 %v1026_v0  ;;  %v95_v3 = vld [vmem:[#allocation7 + $0x10] sm:$0xff]  ;;  %v782_v4 = vpack.c.bf16 %v94_v2, %v93_v1  ;;  %v96_v5 = vld [vmem:[#allocation7 + $0x18] sm:$0xff]  ;;  %v97_v8 = vld [vmem:[#allocation7 + $0x20] sm:$0xff] }
  0x38   :  { %v786_v6 = vpack.c.bf16 %v96_v5, %v95_v3  ;;  %v59_v7 = vld [vmem:[#allocation2] sm:$0xff]  ;;  %v98_v9 = vld [vmem:[#allocation7 + $0x28] sm:$0xff]  ;;  %v61_v10 = vld [vmem:[#allocation5] sm:$0xff] }
  0x39   :  { %783 = vmatprep.subr.bf16.mxu0 %v782_v4  ;;  %639 = vmatprep.mubr.f32.mxu0 %v59_v7  ;;  %v62_v11 = vld [vmem:[#allocation5 + $0x8] sm:$0xff]  ;;  %v790_v13 = vpack.c.bf16 %v98_v9, %v97_v8  ;;  %v63_v14 = vld [vmem:[#allocation5 + $0x10] sm:$0xff]  ;;  %v64_v15 = vld [vmem:[#allocation5 + $0x18] sm:$0xff] }
  0x3a   :  { %785 = vmatpush3.bf16.xpose.msra.mxu0 %v782_v4  ;;  %v1108_v12 = vpack.c.bf16 %v62_v11, %v61_v10  ;;  %v99_v16 = vld [vmem:[#allocation7 + $0x30] sm:$0xff]  ;;  %v100_v17 = vld [vmem:[#allocation7 + $0x38] sm:$0xff]  ;;  %v1112_v18 = vpack.c.bf16 %v64_v15, %v63_v14  ;;  %v65_v20 = vld [vmem:[#allocation5 + $0x20] sm:$0xff] }
  0x3b   :  { %787 = vmatprep.subr.bf16.mxu0 %v786_v6  ;;  %v794_v19 = vpack.c.bf16 %v100_v17, %v99_v16  ;;  %v66_v21 = vld [vmem:[#allocation5 + $0x28] sm:$0xff]  ;;  %v101_v22 = vld [vmem:[#allocation7 + $0x40] sm:$0xff]  ;;  %v67_v26 = vld [vmem:[#allocation5 + $0x30] sm:$0xff] }
  0x3c   :  { %816 = vmatpush3.bf16.xpose.msra.mxu1 %v1108_v12  ;;  %v102_v23 = vld [vmem:[#allocation7 + $0x48] sm:$0xff]  ;;  %v1116_v24 = vpack.c.bf16 %v66_v21, %v65_v20  ;;  %v68_v27 = vld [vmem:[#allocation5 + $0x38] sm:$0xff]  ;;  %v103_v28 = vld [vmem:[#allocation7 + $0x50] sm:$0xff] }
  0x3d   :  { %817 = vmatprep.subr.bf16.mxu1 %v1026_v0  ;;  %v798_v25 = vpack.c.bf16 %v102_v23, %v101_v22  ;;  %v104_v29 = vld [vmem:[#allocation7 + $0x58] sm:$0xff]  ;;  %v1120_v30 = vpack.c.bf16 %v68_v27, %v67_v26  ;;  %v69_v32 = vld [vmem:[#allocation5 + $0x40] sm:$0xff]  ;;  %v70_v33 = vld [vmem:[#allocation5 + $0x48] sm:$0xff] }
  0x3e   :  { %v802_v31 = vpack.c.bf16 %v104_v29, %v103_v28  ;;  %v105_v34 = vld [vmem:[#allocation7 + $0x60] sm:$0xff]  ;;  %v106_v35 = vld [vmem:[#allocation7 + $0x68] sm:$0xff]  ;;  %v1124_v36 = vpack.c.bf16 %v70_v33, %v69_v32  ;;  %v71_v38 = vld [vmem:[#allocation5 + $0x50] sm:$0xff] }
  0x3f   :  { %v806_v37 = vpack.c.bf16 %v106_v35, %v105_v34  ;;  %v72_v39 = vld [vmem:[#allocation5 + $0x58] sm:$0xff]  ;;  %v107_v40 = vld [vmem:[#allocation7 + $0x70] sm:$0xff]  ;;  %v73_v44 = vld [vmem:[#allocation5 + $0x60] sm:$0xff] }
  0x40   :  { %v108_v41 = vld [vmem:[#allocation7 + $0x78] sm:$0xff]  ;;  %v1128_v42 = vpack.c.bf16 %v72_v39, %v71_v38  ;;  %v74_v45 = vld [vmem:[#allocation5 + $0x68] sm:$0xff]  ;;  %v75_v47 = vld [vmem:[#allocation5 + $0x70] sm:$0xff] }
  0x41   :  { %v810_v43 = vpack.c.bf16 %v108_v41, %v107_v40  ;;  %v1132_v46 = vpack.c.bf16 %v74_v45, %v73_v44  ;;  %v76_v48 = vld [vmem:[#allocation5 + $0x78] sm:$0xff]  ;;  %v77_v49 = vld [vmem:[#allocation5 + $0x80] sm:$0xff]  ;;  %v78_v50 = vld [vmem:[#allocation5 + $0x88] sm:$0xff] }
  0x42   :  { %789 = vmatpush3.bf16.xpose.msra.mxu0 %v786_v6  ;;  %v1137_v51 = vpack.c.bf16 %v76_v48, %v75_v47  ;;  %v60_v52 = vld [vmem:[#allocation2 + $0x8] sm:$0xff]  ;;  %v1139_v53 = vpack.c.bf16 %v78_v50, %v77_v49  ;;  %v79_v54 = vld [vmem:[#allocation5 + $0x90] sm:$0xff]  ;;  %v81_v57 = vld [vmem:[#allocation5 + $0xa0] sm:$0xff] }
  0x43   :  { %791 = vmatprep.subr.bf16.mxu0 %v790_v13  ;;  %v80_v55 = vld [vmem:[#allocation5 + $0x98] sm:$0xff]  ;;  %v82_v58 = vld [vmem:[#allocation5 + $0xa8] sm:$0xff]  ;;  %v83_v60 = vld [vmem:[#allocation5 + $0xb0] sm:$0xff] }
  0x44   :  { %819 = vmatpush3.bf16.xpose.msra.mxu1 %v1112_v18  ;;  %v1145_v56 = vpack.c.bf16 %v80_v55, %v79_v54  ;;  %v1149_v59 = vpack.c.bf16 %v82_v58, %v81_v57  ;;  %v84_v61 = vld [vmem:[#allocation5 + $0xb8] sm:$0xff]  ;;  %v85_v63 = vld [vmem:[#allocation5 + $0xc0] sm:$0xff]  ;;  %v86_v1 = vld [vmem:[#allocation5 + $0xc8] sm:$0xff] }
  0x45   :  { %820 = vmatprep.subr.bf16.mxu1 %v1026_v0  ;;  %v1153_v62 = vpack.c.bf16 %v84_v61, %v83_v60  ;;  %v1157_v2 = vpack.c.bf16 %v86_v1, %v85_v63  ;;  %v87_v3 = vld [vmem:[#allocation5 + $0xd0] sm:$0xff]  ;;  %v88_v4 = vld [vmem:[#allocation5 + $0xd8] sm:$0xff]  ;;  %v89_v6 = vld [vmem:[#allocation5 + $0xe0] sm:$0xff] }
  0x46   :  { %v1161_v5 = vpack.c.bf16 %v88_v4, %v87_v3  ;;  %v90_v7 = vld [vmem:[#allocation5 + $0xe8] sm:$0xff]  ;;  %v91_v9 = vld [vmem:[#allocation5 + $0xf0] sm:$0xff]  ;;  %v92_v10 = vld [vmem:[#allocation5 + $0xf8] sm:$0xff] }
  0x47   :  { %v1165_v8 = vpack.c.bf16 %v90_v7, %v89_v6  ;;  %v1169_v11 = vpack.c.bf16 %v92_v10, %v91_v9  ;;  %v520_v14 = vld [vmem:[%s1228_s3] ss:$0 sm:$0xff]  ;;  %s1029_s3 = smov [#allocation8]  }
  0x48   :  { %s507_s26 = sshll.u32 %s1029_s3, 4  ;;  %s508_s26 = int_to_ptr.vmem [resolvable:$true] %s507_s26 }
  0x49   :  { %s993_s29 = scalar_lea.vmem %s508_s26, 256  ;;  %p998_p11 = scmp.lt.s32.totalorder %s508_s26, %s508_s26 }
  0x4a   :  { %793 = vmatpush3.bf16.xpose.msra.mxu0 %v790_v13  ;;  %v1028_v13 = vmov 0.0   ;;  %p994_p10 = scmp.ne.s32.totalorder %s508_s26, %s993_s29  ;;  %p999_p12 = scmp.lt.s32.totalorder %s993_s29, %s993_s29 }
  0x4b   :  { %795 = vmatprep.subr.bf16.mxu0 %v794_v19  ;;  %674 = vmatprep.mubr.msk.f32.mxu1 %vm1027_vm0, %v1028_v13 }
  0x4c   :  { %822 = vmatpush3.bf16.xpose.msra.mxu1 %v1116_v24  ;;  %p1000_p13 = por %p999_p12, %p998_p11 }
  0x4d   :  { %823 = vmatprep.subr.bf16.mxu1 %v1026_v0 }
  0x4e   :  { %p1001_p0 = pnand %p1000_p13, %p994_p10 }
  0x52   :  { %797 = vmatpush3.bf16.xpose.msra.mxu0 %v794_v19 }
  0x53   :  { %799 = vmatprep.subr.bf16.mxu0 %v798_v25 }
  0x54   :  { %825 = vmatpush3.bf16.xpose.msra.mxu1 %v1120_v30 }
  0x55   :  { %826 = vmatprep.subr.bf16.mxu1 %v1026_v0 }
  0x5a   :  { %801 = vmatpush3.bf16.xpose.msra.mxu0 %v798_v25 }
  0x5b   :  { %803 = vmatprep.subr.bf16.mxu0 %v802_v31 }
  0x5c   :  { %828 = vmatpush3.bf16.xpose.msra.mxu1 %v1124_v36 }
  0x5d   :  { %829 = vmatprep.subr.bf16.mxu1 %v1026_v0 }
  0x62   :  { %805 = vmatpush3.bf16.xpose.msra.mxu0 %v802_v31 }
  0x63   :  { %807 = vmatprep.subr.bf16.mxu0 %v806_v37 }
  0x64   :  { %831 = vmatpush3.bf16.xpose.msra.mxu1 %v1128_v42 }
  0x65   :  { %832 = vmatprep.subr.bf16.mxu1 %v1026_v0 }
  0x6a   :  { %809 = vmatpush3.bf16.xpose.msra.mxu0 %v806_v37 }
  0x6b   :  { %811 = vmatprep.subr.bf16.mxu0 %v810_v43 }
  0x6c   :  { %834 = vmatpush3.bf16.xpose.msra.mxu1 %v1132_v46 }
  0x6d   :  { %835 = vmatprep.subr.bf16.mxu1 %v1026_v0 }
  0x72   :  { %813 = vmatpush3.bf16.xpose.msra.mxu0 %v810_v43 }
  0x73   :  { %838 = vmatprep.subr.bf16.mxu0 %v1026_v0 }
  0x74   :  { %837 = vmatpush3.bf16.xpose.msra.mxu1 %v1137_v51 }
  0x75   :  { %862 = vmatprep.subr.bf16.mxu1 %v1026_v0 }
  0x79   :  { %640 = vmatmul.mubr.f32.vlgmr.msra.gmra.mrb[0].mxu0 %v60_v52 }
  0x7a   :  { %840 = vmatpush3.bf16.xpose.msra.mxu0 %v1139_v53  ;;  %709 = vmatprep.mubr.msk.f32.mxu0 %vm1027_vm0, %v1028_v13 }
  0x7b   :  { %841 = vmatprep.subr.bf16.mxu0 %v1026_v0 }
  0x82   :  { %843 = vmatpush3.bf16.xpose.msra.mxu0 %v1145_v56 }
  0x83   :  { %844 = vmatprep.subr.bf16.mxu0 %v1026_v0 }
  0x8a   :  { %846 = vmatpush3.bf16.xpose.msra.mxu0 %v1149_v59 }
  0x8b   :  { %847 = vmatprep.subr.bf16.mxu0 %v1026_v0 }
  0x92   :  { %849 = vmatpush3.bf16.xpose.msra.mxu0 %v1153_v62 }
  0x93   :  { %850 = vmatprep.subr.bf16.mxu0 %v1026_v0 }
  0x9a   :  { %852 = vmatpush3.bf16.xpose.msra.mxu0 %v1157_v2 }
  0x9b   :  { %853 = vmatprep.subr.bf16.mxu0 %v1026_v0 }
  0xa2   :  { %855 = vmatpush3.bf16.xpose.msra.mxu0 %v1161_v5 }
  0xa3   :  { %856 = vmatprep.subr.bf16.mxu0 %v1026_v0 }
  0xaa   :  { %858 = vmatpush3.bf16.xpose.msra.mxu0 %v1165_v8 }
  0xab   :  { %859 = vmatprep.subr.bf16.mxu0 %v1026_v0 }
  0xb2   :  { %861 = vmatpush3.bf16.xpose.msra.mxu0 %v1169_v11 }
 0x14c   :  { %v641_v15 = vpop.f32.mrb[0].mxu0 }
 0x14d   :  { %v192_v16 = vadd.f32 %v641_v15, %v520_v14  ;;  %v175_v17 = vpop.f32.mrb[1].mxu0 }
 0x14e   :  { %v191_v19 = vadd.f32 %v520_v14, %v175_v17 }
 0x14f   :  { %710 = vmatmul.mubr.f32.vlgmr.msra.gmra.mrb[2].mxu0 %v192_v16 }
 0x150   :  { %675 = vmatmul.mubr.f32.vlgmr.msra.gmra.mrb[0].mxu1 %v191_v19 }
 0x151   :  { %864 = vmatpush3.bf16.msra.mxu1 %v1108_v12  ;;  %744 = vmatprep.mubr.msk.f32.mxu1 %vm1027_vm0, %v1028_v13  ;;  %v333_v12 = vlaneseq }
 0x152   :  { %865 = vmatprep.subr.bf16.mxu1 %v1026_v0 }
 0x155   :  { %867 = vmatpush3.bf16.msra.mxu1 %v1112_v18  ;;  %v334_v18 = vand.u32 127, %v333_v12 }
 0x156   :  { %868 = vmatprep.subr.bf16.mxu1 %v1026_v0 }
 0x157   :  { %vm335_vm1 = vcmp.lt.s32.totalorder %v334_v18, 8 }
 0x159   :  { %870 = vmatpush3.bf16.msra.mxu1 %v1116_v24 }
 0x15a   :  { %871 = vmatprep.subr.bf16.mxu1 %v1026_v0 }
 0x15d   :  { %873 = vmatpush3.bf16.msra.mxu1 %v1120_v30 }
 0x15e   :  { %874 = vmatprep.subr.bf16.mxu1 %v1026_v0 }
 0x161   :  { %876 = vmatpush3.bf16.msra.mxu1 %v1124_v36 }
 0x162   :  { %877 = vmatprep.subr.bf16.mxu1 %v1026_v0 }
 0x165   :  { %879 = vmatpush3.bf16.msra.mxu1 %v1128_v42 }
 0x166   :  { %880 = vmatprep.subr.bf16.mxu1 %v1026_v0 }
 0x169   :  { %882 = vmatpush3.bf16.msra.mxu1 %v1132_v46 }
 0x16a   :  { %883 = vmatprep.subr.bf16.mxu1 %v1026_v0 }
 0x16d   :  { %885 = vmatpush3.bf16.msra.mxu1 %v1137_v51 }
 0x16e   :  { %886 = vmatprep.subr.bf16.mxu1 %v1026_v0 }
 0x222   :  { %v329_v20 = vpop.f32.mrb[2].mxu0 }
 0x223   :  { %v259_v21 = vpop.f32.mrb[0].mxu1  ;;  %v711_v22 = vpop.f32.mrb[3].mxu0  ;;  %v339_v25 = vsel %vm335_vm1, %v329_v20, -1e+30 }
 0x224   :  { %v676_v23 = vpop.f32.mrb[1].mxu1  ;;  %v338_v24 = vsel %vm335_vm1, %v259_v21, -1e+30 }
 0x225   :  { %340 = vmax.xlane.f32.xlu0 %v338_v24 }
 0x229   :  { %342 = vmax.xlane.f32.xlu0 %v339_v25 }
 0x2b2   :  { %v341_v26 = vpop.xlane.xlu0 %340 }
 0x2b3   :  { %v344_v27 = vsub.f32 %v338_v24, %v341_v26 }
 0x2b5   :  { %v346_v28 = vmul.f32 1.442695, %v344_v27 }
 0x2b6   :  { %v343_v29 = vpop.xlane.xlu0 %342 }
 0x2b7   :  { %919 = vpow2.f32 %v346_v28  ;;  %v345_v30 = vsub.f32 %v339_v25, %v343_v29 }
 0x2b9   :  { %v348_v31 = vmul.f32 1.442695, %v345_v30 }
 0x2bb   :  { %921 = vpow2.f32 %v348_v31 }
 0x2c1   :  { %v920_v32 = vpop.eup %919 }
 0x2c2   :  { %350 = vadd.xlane.f32.xlu1 %v920_v32 }
 0x2c5   :  { %v922_v33 = vpop.eup %921 }
 0x2c6   :  { %352 = vadd.xlane.f32.xlu1 %v922_v33 }
 0x34f   :  { %v351_v34 = vpop.xlane.xlu1 %350 }
 0x350   :  { %923 = vrcp.f32 %v351_v34 }
 0x353   :  { %v353_v37 = vpop.xlane.xlu1 %352 }
 0x354   :  { %925 = vrcp.f32 %v353_v37 }
 0x35a   :  { %v924_v35 = vpop.eup %923 }
 0x35b   :  { %v358_v36 = vmul.f32 %v924_v35, %v920_v32 }
 0x35d   :  { %745 = vmatmul.mubr.f32.vlgmr.msra.gmra.mrb[2].mxu1 %v358_v36 }
 0x35e   :  { %888 = vmatpush3.bf16.msra.mxu1 %v1139_v53  ;;  %779 = vmatprep.mubr.msk.f32.mxu1 %vm1027_vm0, %v1028_v13  ;;  %v926_v38 = vpop.eup %925 }
 0x35f   :  { %889 = vmatprep.subr.bf16.mxu1 %v1026_v0  ;;  %v359_v39 = vmul.f32 %v926_v38, %v922_v33 }
 0x362   :  { %891 = vmatpush3.bf16.msra.mxu1 %v1145_v56 }
 0x363   :  { %892 = vmatprep.subr.bf16.mxu1 %v1026_v0 }
 0x366   :  { %894 = vmatpush3.bf16.msra.mxu1 %v1149_v59 }
 0x367   :  { %895 = vmatprep.subr.bf16.mxu1 %v1026_v0 }
 0x36a   :  { %897 = vmatpush3.bf16.msra.mxu1 %v1153_v62 }
 0x36b   :  { %898 = vmatprep.subr.bf16.mxu1 %v1026_v0 }
 0x36e   :  { %900 = vmatpush3.bf16.msra.mxu1 %v1157_v2 }
 0x36f   :  { %901 = vmatprep.subr.bf16.mxu1 %v1026_v0 }
 0x372   :  { %903 = vmatpush3.bf16.msra.mxu1 %v1161_v5 }
 0x373   :  { %904 = vmatprep.subr.bf16.mxu1 %v1026_v0 }
 0x376   :  { %906 = vmatpush3.bf16.msra.mxu1 %v1165_v8 }
 0x377   :  { %907 = vmatprep.subr.bf16.mxu1 %v1026_v0 }
 0x37a   :  { %909 = vmatpush3.bf16.msra.mxu1 %v1169_v11 }
 0x37d   :  { %780 = vmatmul.mubr.f32.vlgmr.msra.gmra.mrb[4].mxu1 %v359_v39 }
 0x430   :  { %v426_v40 = vpop.f32.mrb[2].mxu1 }
 0x431   :  { %500 = vst [vmem:[#allocation8] sm:$0xff] %v426_v40  ;;  %v746_v41 = vpop.f32.mrb[3].mxu1 }
 0x450   :  { %v496_v42 = vpop.f32.mrb[4].mxu1 }
 0x451   :  { %501 = vst [vmem:[#allocation8 + $0x8] sm:$0xff] %v496_v42  ;;  %v781_v43 = vpop.f32.mrb[5].mxu1 }
 0x452   :  { %1004 = shalt.err (!%p1001_p0)
}
 0x453   :  { %s1005_s6 = scalar_lea.hbm %s1229_s4, 256 }
 0x454   :  { %p1006_p1 = scmp.ne.s32.totalorder %s1229_s4, %s1005_s6  ;;  %p1009_p2 = scmp.lt.u32.totalorder %s1005_s6, %s1229_s4 }
 0x456   :  { %p1011_p3 = pnand %p1009_p2, %p1006_p1 }
 0x458   :  { %1014 = shalt.err (!%p1011_p3)
}
 0x459   :  { %513 = dma.vmem_to_hbm [thread:$0]  %s508_s26, 256, %s1229_s4, [#allocation4], %s1023_s27, %s1023_s27, %s1024_s28  }
 0x45a   :  { %1019 = dma.done.wait [#allocation4], 256  }
 0x45b   :  { %1020 = vsyncadd [#allocation4], 4294967040 }
 0x45c   :  { %517 = vsyncpa [#allocation3], 1 }
 0x45d   :  { %518 = vsyncpa [#allocation6], 1 }
 0x45e   :  { %519 = vsyncpa [#allocation4], 1 }

</bundles_post_ra>
